<compile_context>
chip_gen: v5e
topology: v5e:2x2
jax: 0.10.0
libtpu: 0.0.40
codegen_flags: <defaults>
</compile_context>

<pallas_src>
import jax
import jax.numpy as jnp
from jax.experimental import pallas as pl
from jax.experimental.pallas import tpu as pltpu

_BN_EPS = 1e-5
_NORM_EPS = 1e-12
_FUSE_EPS = 1e-5


def _sigmoid(x):
    return 1.0 / (1.0 + jnp.exp(-x))


# ---------------------------------------------------------------------------
# Fused 3x3 conv kernels: patches built in-kernel from 3 row-shifted views.
# ---------------------------------------------------------------------------
def _conv_row_matmul(r0_ref, r1_ref, r2_ref, w_ref, w_out):
    """im2col one output row in VMEM and contract against (Cout, 9*Cin)."""
    cols = []
    for r_ref in (r0_ref, r1_ref, r2_ref):          # kh = 0, 1, 2
        row = r_ref[0, 0]                            # (Cin, W + 2)
        for kw in range(3):
            cols.append(row[:, kw:kw + w_out])       # (Cin, W)
    patch = jnp.concatenate(cols, axis=0)            # (9*Cin, W)
    return jnp.dot(w_ref[...], patch, preferred_element_type=jnp.float32)


def _conv_bn_prelu_kernel(r0_ref, r1_ref, r2_ref, w_ref, scale_ref, shift_ref,
                          alpha_ref, out_ref):
    w_out = out_ref.shape[-1]
    y = _conv_row_matmul(r0_ref, r1_ref, r2_ref, w_ref, w_out)   # (Cout, W)
    y = y * scale_ref[...] + shift_ref[...]          # folded BN (+ conv bias)
    y = jnp.where(y >= 0.0, y, alpha_ref[...] * y)   # PReLU
    out_ref[0, 0] = y


def _conv_bias_sigmoid_kernel(r0_ref, r1_ref, r2_ref, w_ref, bias_ref, out_ref):
    w_out = out_ref.shape[-1]
    y = _conv_row_matmul(r0_ref, r1_ref, r2_ref, w_ref, w_out) + bias_ref[...]
    out_ref[0, 0] = _sigmoid(y)


def _conv3x3_call(x_nhcw, w_mat, col_params, kernel_fn):
    """3x3 / stride 1 / pad 1 conv with a fused per-channel epilogue.

    x_nhcw     : (N, H, Cin, W) activations (channels-inner layout).
    w_mat      : (Cout, 9*Cin), columns ordered (kh, kw, ci).
    col_params : list of (Cout, 1) per-channel epilogue vectors.
    Returns (N, H, Cout, W) float32.
    """
    n, h, cin, w = x_nhcw.shape
    cout = w_mat.shape[0]
    assert w_mat.shape[1] == 9 * cin
    xp = jnp.pad(x_nhcw.astype(jnp.float32), ((0, 0), (1, 1), (0, 0), (1, 1)))
    wp = w + 2

    def _row_spec(shift):
        # block size 1 along the padded-H dim => block index == element index,
        # so vertical kernel taps are expressed as shifted-slice in_specs.
        return pl.BlockSpec((1, 1, cin, wp),
                            lambda i, j, s=shift: (i, j + s, 0, 0))

    in_specs = [_row_spec(0), _row_spec(1), _row_spec(2),
                pl.BlockSpec((cout, 9 * cin), lambda i, j: (0, 0))]
    in_specs += [pl.BlockSpec((cout, 1), lambda i, j: (0, 0)) for _ in col_params]

    return pl.pallas_call(
        kernel_fn,
        out_shape=jax.ShapeDtypeStruct((n, h, cout, w), jnp.float32),
        grid=(n, h),
        in_specs=in_specs,
        out_specs=pl.BlockSpec((1, 1, cout, w), lambda i, j: (i, j, 0, 0)),
        compiler_params=pltpu.CompilerParams(
            dimension_semantics=("parallel", "parallel"),
            vmem_limit_bytes=32 * 1024 * 1024),
    )(xp, xp, xp, w_mat.astype(jnp.float32),
      *[p.astype(jnp.float32) for p in col_params])


# ---------------------------------------------------------------------------
# Similarity row-sums:  out[r] = < a_norm[r, :], sum_r' b_norm[r', :] >
# (== torch.sum(bmm(normalize(a), normalize(b).T), dim=-1))
# ---------------------------------------------------------------------------
def _row_cosine_sum_kernel(a_ref, b_ref, out_ref):
    a = a_ref[0]                                                  # (R, K)
    b = b_ref[0]
    a_n = a / jnp.maximum(jnp.sqrt(jnp.sum(a * a, axis=1, keepdims=True)), _NORM_EPS)
    b_n = b / jnp.maximum(jnp.sqrt(jnp.sum(b * b, axis=1, keepdims=True)), _NORM_EPS)
    b_sum = jnp.sum(b_n, axis=0, keepdims=True)                   # (1, K)
    out_ref[0] = jnp.sum(a_n * b_sum, axis=1, keepdims=True)      # (R, 1)


def _row_cosine_sum(a_brk, b_brk):
    bsz, r, k = a_brk.shape
    spec = pl.BlockSpec((1, r, k), lambda b: (b, 0, 0))
    return pl.pallas_call(
        _row_cosine_sum_kernel,
        out_shape=jax.ShapeDtypeStruct((bsz, r, 1), jnp.float32),
        grid=(bsz,),
        in_specs=[spec, spec],
        out_specs=pl.BlockSpec((1, r, 1), lambda b: (b, 0, 0)),
        compiler_params=pltpu.CompilerParams(dimension_semantics=("parallel",)),
    )(a_brk.astype(jnp.float32), b_brk.astype(jnp.float32))


# ---------------------------------------------------------------------------
# Final fusion: weighted blend -> sigmoid -> spatial normalization.
# Operates on lane-dense (C, H*W) blocks, one batch element per grid step.
# ---------------------------------------------------------------------------
def _fusion_kernel(ac_ref, ah_ref, aw_ref, sc_ref, sh_ref, sw_ref, out_ref):
    a_c = ac_ref[0]                                               # (C, HW)
    a_h = ah_ref[0]
    a_w = aw_ref[0]
    num = a_c * sc_ref[0] + a_h * sh_ref[0] + a_w * sw_ref[0]
    den = a_c + a_h + a_w + _FUSE_EPS
    att = _sigmoid(num / den)                                     # (C, HW)
    s = jnp.sum(att, axis=1, keepdims=True)                       # (C, 1) = sum over H, W
    out_ref[0] = att / (s + _FUSE_EPS)


def _fuse_attention(a_c, a_h, a_w, sc, sh_flat, sw_flat):
    bsz, c, hw = a_c.shape
    full = pl.BlockSpec((1, c, hw), lambda b: (b, 0, 0))
    return pl.pallas_call(
        _fusion_kernel,
        out_shape=jax.ShapeDtypeStruct((bsz, c, hw), jnp.float32),
        grid=(bsz,),
        in_specs=[full, full, full,
                  pl.BlockSpec((1, c, 1), lambda b: (b, 0, 0)),
                  pl.BlockSpec((1, 1, hw), lambda b: (b, 0, 0)),
                  pl.BlockSpec((1, 1, hw), lambda b: (b, 0, 0))],
        out_specs=full,
        compiler_params=pltpu.CompilerParams(dimension_semantics=("parallel",)),
    )(a_c, a_h, a_w, sc, sh_flat, sw_flat)


# ---------------------------------------------------------------------------
# Full forward pass.
# ---------------------------------------------------------------------------
def fusion_module_v4_forward(f_ch, f_sp, params):
    b, c, h, w = f_ch.shape
    hw = h * w
    f_ch = f_ch.astype(jnp.float32)
    f_sp = f_sp.astype(jnp.float32)

    # ---- alpha_C / alpha_H / alpha_W branches -----------------------------
    x_cat = jnp.concatenate([f_ch, f_sp], axis=1)            # (B, 2C, H, W)
    x_nhcw = jnp.transpose(x_cat, (0, 2, 1, 3))              # (B, H, 2C, W)

    # the three first convs are merged into one 2C -> 3C conv (+BN+PReLU)
    t_all = _conv3x3_call(
        x_nhcw, params["w1_mat"],
        [params["bn_scale"], params["bn_shift"], params["prelu_alpha"]],
        _conv_bn_prelu_kernel)                                # (B, H, 3C, W)

    alphas = []
    for br in range(3):
        t_br = t_all[:, :, br * c:(br + 1) * c, :]            # (B, H, C, W)
        a_br = _conv3x3_call(t_br, params["w2_mats"][br],
                             [params["b2_cols"][br]],
                             _conv_bias_sigmoid_kernel)        # (B, H, C, W)
        alphas.append(jnp.transpose(a_br, (0, 2, 1, 3)).reshape(b, c, hw))
    alpha_c, alpha_h, alpha_w = alphas

    # ---- similarity terms Sc / Sh / Sw ------------------------------------
    sc = _row_cosine_sum(f_ch.reshape(b, c, hw), f_sp.reshape(b, c, hw))    # (B, C, 1)

    fc_h = jnp.transpose(f_ch, (0, 2, 1, 3)).reshape(b, h, c * w)
    fs_h = jnp.transpose(f_sp, (0, 2, 1, 3)).reshape(b, h, c * w)
    sh = _row_cosine_sum(fc_h, fs_h)                                        # (B, H, 1)

    fc_w = jnp.transpose(f_ch, (0, 3, 1, 2)).reshape(b, w, c * h)
    fs_w = jnp.transpose(f_sp, (0, 3, 1, 2)).reshape(b, w, c * h)
    sw = _row_cosine_sum(fc_w, fs_w)                                        # (B, W, 1)

    # broadcast Sh (per-row) / Sw (per-column) over the flattened H*W axis
    sh_flat = jnp.broadcast_to(sh, (b, h, w)).reshape(b, 1, hw)
    sw_flat = jnp.broadcast_to(sw.reshape(b, 1, w), (b, h, w)).reshape(b, 1, hw)

    out = _fuse_attention(alpha_c, alpha_h, alpha_w, sc, sh_flat, sw_flat)  # (B, C, HW)
    return out.reshape(b, c, h, w)


# ---------------------------------------------------------------------------
# Parameter packing (fold BN + conv bias into per-channel scale / shift).
# ---------------------------------------------------------------------------
def pack_params(raw, c):
    w1_all = jnp.concatenate([r["w1"] for r in raw], axis=0)         # (3C, 2C, 3, 3)
    w1_mat = jnp.transpose(w1_all, (0, 2, 3, 1)).reshape(3 * c, -1)  # (3C, 9*2C)

    scales, shifts, alphas = [], [], []
    for r in raw:
        s = r["gamma"] / jnp.sqrt(r["var"] + _BN_EPS)
        scales.append(s)
        shifts.append(r["beta"] + (r["b1"] - r["mean"]) * s)
        alphas.append(jnp.full((c,), r["alpha"], jnp.float32))

    return dict(
        w1_mat=w1_mat,
        bn_scale=jnp.concatenate(scales).reshape(3 * c, 1),
        bn_shift=jnp.concatenate(shifts).reshape(3 * c, 1),
        prelu_alpha=jnp.concatenate(alphas).reshape(3 * c, 1),
        w2_mats=[jnp.transpose(r["w2"], (0, 2, 3, 1)).reshape(c, -1) for r in raw],
        b2_cols=[r["b2"].reshape(c, 1) for r in raw],
    )


# ---------------------------------------------------------------------------
# Pure-JAX reference mirroring the PyTorch forward (for the sanity check).
# ---------------------------------------------------------------------------
def _reference_forward(f_ch, f_sp, raw):
    b, c, h, w = f_ch.shape
    hw = h * w

    def conv(x, wt, bias):
        y = jax.lax.conv_general_dilated(
            x, wt, window_strides=(1, 1), padding=((1, 1), (1, 1)),
            dimension_numbers=("NCHW", "OIHW", "NCHW"))
        return y + bias[None, :, None, None]

    def branch(x, p):
        y = conv(x, p["w1"], p["b1"])
        y = (y - p["mean"][None, :, None, None]) / jnp.sqrt(
            p["var"][None, :, None, None] + _BN_EPS)
        y = y * p["gamma"][None, :, None, None] + p["beta"][None, :, None, None]
        y = jnp.where(y >= 0.0, y, p["alpha"] * y)
        return _sigmoid(conv(y, p["w2"], p["b2"]))

    x_cat = jnp.concatenate([f_ch, f_sp], axis=1)
    a_c = branch(x_cat, raw[0])
    a_h = branch(x_cat, raw[1])
    a_w = branch(x_cat, raw[2])

    def l2n(x, axis):
        n = jnp.sqrt(jnp.sum(x * x, axis=axis, keepdims=True))
        return x / jnp.maximum(n, _NORM_EPS)

    fc, fs = f_ch, f_sp
    fc_a = l2n(fc.reshape(b, c, hw), 2)
    fs_a = l2n(jnp.transpose(fs.reshape(b, c, hw), (0, 2, 1)), 1)
    sc_norm = jnp.sum(jnp.einsum("bik,bkj->bij", fc_a, fs_a), axis=2)[..., None]

    fc_b = l2n(jnp.transpose(fc, (0, 2, 1, 3)).reshape(b, h, c * w), 2)
    fs_b = l2n(jnp.transpose(jnp.transpose(fs, (0, 2, 1, 3)).reshape(b, h, c * w),
                             (0, 2, 1)), 1)
    sh_norm = jnp.sum(jnp.einsum("bik,bkj->bij", fc_b, fs_b), axis=2)[..., None]

    fc_c = l2n(jnp.transpose(fc, (0, 3, 1, 2)).reshape(b, w, c * h), 2)
    fs_c = l2n(jnp.transpose(jnp.transpose(fs, (0, 3, 1, 2)).reshape(b, w, c * h),
                             (0, 2, 1)), 1)
    sw_norm = jnp.sum(jnp.einsum("bik,bkj->bij", fc_c, fs_c), axis=2)[..., None]

    sc_full = jnp.broadcast_to(sc_norm, (b, c, hw)).reshape(b, c, h, w)
    sh_full = jnp.transpose(
        jnp.broadcast_to(sh_norm, (b, h, c * w)).reshape(b, h, c, w), (0, 2, 1, 3))
    sw_full = jnp.transpose(
        jnp.broadcast_to(sw_norm, (b, w, c * h)).reshape(b, w, c, h), (0, 2, 3, 1))

    ac = (a_c * sc_full + a_h * sh_full + a_w * sw_full) / (a_c + a_h + a_w + _FUSE_EPS)
    ac = _sigmoid(ac)
    ac_sum = jnp.sum(ac, axis=(2, 3), keepdims=True)
    return ac / (ac_sum + _FUSE_EPS)


if __name__ == "__main__":
    key = jax.random.PRNGKey(0)
    B, C, H, W = 2, 4, 16, 16

    k_in, k_par = jax.random.split(key)
    k1, k2 = jax.random.split(k_in)
    F_ch = jax.random.normal(k1, (B, C, H, W), jnp.float32)
    F_sp = jax.random.normal(k2, (B, C, H, W), jnp.float32)

    def conv_init(k, cout, cin):
        kw_, kb_ = jax.random.split(k)
        bound = 1.0 / (cin * 9) ** 0.5
        wt = jax.random.uniform(kw_, (cout, cin, 3, 3), jnp.float32, -bound, bound)
        bs = jax.random.uniform(kb_, (cout,), jnp.float32, -bound, bound)
        return wt, bs

    raw = []
    for bk in jax.random.split(k_par, 3):
        ks = jax.random.split(bk, 6)
        w1, b1 = conv_init(ks[0], C, 2 * C)
        w2, b2 = conv_init(ks[1], C, C)
        raw.append(dict(
            w1=w1, b1=b1, w2=w2, b2=b2,
            gamma=jax.random.uniform(ks[2], (C,), jnp.float32, 0.5, 1.5),
            beta=0.1 * jax.random.normal(ks[3], (C,), jnp.float32),
            mean=0.1 * jax.random.normal(ks[4], (C,), jnp.float32),
            var=jax.random.uniform(ks[5], (C,), jnp.float32, 0.5, 1.5),
            alpha=jnp.float32(0.25),   # PReLU default init
        ))

    params = pack_params(raw, C)

    out = fusion_module_v4_forward(F_ch, F_sp, params)
    jax.block_until_ready(out)

    ref = _reference_forward(F_ch, F_sp, raw)
    assert out.shape == (B, C, H, W)
    max_err = float(jnp.max(jnp.abs(out - ref)))
    assert jnp.allclose(out, ref, atol=1e-5, rtol=1e-4), f"max abs err {max_err}"

    print("KERNEL_OK")
</pallas_src>

<mosaic_0001>
module attributes {stable_mosaic.version = 11 : i64} {
  func.func @_conv_bn_prelu_kernel(%arg0: i32, %arg1: i32, %arg2: memref<1x1x8x18xf32, #tpu.memory_space<vmem>>, %arg3: memref<1x1x8x18xf32, #tpu.memory_space<vmem>>, %arg4: memref<1x1x8x18xf32, #tpu.memory_space<vmem>>, %arg5: memref<12x72xf32, #tpu.memory_space<vmem>>, %arg6: memref<12x1xf32, #tpu.memory_space<vmem>>, %arg7: memref<12x1xf32, #tpu.memory_space<vmem>>, %arg8: memref<12x1xf32, #tpu.memory_space<vmem>>, %arg9: memref<1x1x12x16xf32, #tpu.memory_space<vmem>>) attributes {dimension_semantics = [#tpu.dimension_semantics<parallel>, #tpu.dimension_semantics<parallel>], iteration_bounds = array<i64: 2, 16>, scalar_prefetch = 0 : i64, scratch_operands = 0 : i64, tpu.core_type = #tpu.core_type<tc>, window_params = [{transform_indices = @transform_0, window_bounds = array<i64: 1, 1, 8, 18>}, {transform_indices = @transform_1, window_bounds = array<i64: 1, 1, 8, 18>}, {transform_indices = @transform_2, window_bounds = array<i64: 1, 1, 8, 18>}, {pipeline_mode = #tpu.pipeline_mode<synchronous>, transform_indices = @transform_3, window_bounds = array<i64: 12, 72>}, {pipeline_mode = #tpu.pipeline_mode<synchronous>, transform_indices = @transform_4, window_bounds = array<i64: 12, 1>}, {pipeline_mode = #tpu.pipeline_mode<synchronous>, transform_indices = @transform_5, window_bounds = array<i64: 12, 1>}, {pipeline_mode = #tpu.pipeline_mode<synchronous>, transform_indices = @transform_6, window_bounds = array<i64: 12, 1>}, {transform_indices = @transform_7, window_bounds = array<i64: 1, 1, 12, 16>}]} {
    %c0 = arith.constant 0 : index
    %c0_0 = arith.constant 0 : index
    %c0_1 = arith.constant 0 : index
    %c0_2 = arith.constant 0 : index
    %0 = vector.load %arg2[%c0, %c0_0, %c0_1, %c0_2] : memref<1x1x8x18xf32, #tpu.memory_space<vmem>>, vector<1x1x8x18xf32>
    %1 = vector.shape_cast %0 : vector<1x1x8x18xf32> to vector<8x18xf32>
    %2 = vector.extract_strided_slice %1 {offsets = [0, 0], sizes = [8, 16], strides = [1, 1]} : vector<8x18xf32> to vector<8x16xf32>
    %3 = vector.extract_strided_slice %1 {offsets = [0, 1], sizes = [8, 16], strides = [1, 1]} : vector<8x18xf32> to vector<8x16xf32>
    %4 = vector.extract_strided_slice %1 {offsets = [0, 2], sizes = [8, 16], strides = [1, 1]} : vector<8x18xf32> to vector<8x16xf32>
    %c0_3 = arith.constant 0 : index
    %c0_4 = arith.constant 0 : index
    %c0_5 = arith.constant 0 : index
    %c0_6 = arith.constant 0 : index
    %5 = vector.load %arg3[%c0_3, %c0_4, %c0_5, %c0_6] : memref<1x1x8x18xf32, #tpu.memory_space<vmem>>, vector<1x1x8x18xf32>
    %6 = vector.shape_cast %5 : vector<1x1x8x18xf32> to vector<8x18xf32>
    %7 = vector.extract_strided_slice %6 {offsets = [0, 0], sizes = [8, 16], strides = [1, 1]} : vector<8x18xf32> to vector<8x16xf32>
    %8 = vector.extract_strided_slice %6 {offsets = [0, 1], sizes = [8, 16], strides = [1, 1]} : vector<8x18xf32> to vector<8x16xf32>
    %9 = vector.extract_strided_slice %6 {offsets = [0, 2], sizes = [8, 16], strides = [1, 1]} : vector<8x18xf32> to vector<8x16xf32>
    %c0_7 = arith.constant 0 : index
    %c0_8 = arith.constant 0 : index
    %c0_9 = arith.constant 0 : index
    %c0_10 = arith.constant 0 : index
    %10 = vector.load %arg4[%c0_7, %c0_8, %c0_9, %c0_10] : memref<1x1x8x18xf32, #tpu.memory_space<vmem>>, vector<1x1x8x18xf32>
    %11 = vector.shape_cast %10 : vector<1x1x8x18xf32> to vector<8x18xf32>
    %12 = vector.extract_strided_slice %11 {offsets = [0, 0], sizes = [8, 16], strides = [1, 1]} : vector<8x18xf32> to vector<8x16xf32>
    %13 = vector.extract_strided_slice %11 {offsets = [0, 1], sizes = [8, 16], strides = [1, 1]} : vector<8x18xf32> to vector<8x16xf32>
    %14 = vector.extract_strided_slice %11 {offsets = [0, 2], sizes = [8, 16], strides = [1, 1]} : vector<8x18xf32> to vector<8x16xf32>
    %15 = tpu.concatenate %2, %3, %4, %7, %8, %9, %12, %13, %14 in 0 : vector<8x16xf32>, vector<8x16xf32>, vector<8x16xf32>, vector<8x16xf32>, vector<8x16xf32>, vector<8x16xf32>, vector<8x16xf32>, vector<8x16xf32>, vector<8x16xf32> -> vector<72x16xf32>
    %c0_11 = arith.constant 0 : index
    %c0_12 = arith.constant 0 : index
    %16 = vector.load %arg5[%c0_11, %c0_12] : memref<12x72xf32, #tpu.memory_space<vmem>>, vector<12x72xf32>
    %cst = arith.constant dense<0.000000e+00> : vector<12x16xf32>
    %17 = tpu.matmul %16, %15, %cst {dimension_numbers = #tpu.dot_dimension_numbers<[1], [0], [0], [1], [0, 0, 1, 1], [], []>} : vector<12x72xf32>, vector<72x16xf32>, vector<12x16xf32> -> vector<12x16xf32>
    %c0_13 = arith.constant 0 : index
    %c0_14 = arith.constant 0 : index
    %18 = vector.load %arg6[%c0_13, %c0_14] : memref<12x1xf32, #tpu.memory_space<vmem>>, vector<12x1xf32>
    %19 = vector.broadcast %18 : vector<12x1xf32> to vector<12x16xf32>
    %20 = arith.mulf %17, %19 : vector<12x16xf32>
    %c0_15 = arith.constant 0 : index
    %c0_16 = arith.constant 0 : index
    %21 = vector.load %arg7[%c0_15, %c0_16] : memref<12x1xf32, #tpu.memory_space<vmem>>, vector<12x1xf32>
    %22 = vector.broadcast %21 : vector<12x1xf32> to vector<12x16xf32>
    %23 = arith.addf %20, %22 : vector<12x16xf32>
    %cst_17 = arith.constant 0.000000e+00 : f32
    %24 = vector.broadcast %cst_17 : f32 to vector<12x16xf32>
    %25 = arith.cmpf oge, %23, %24 : vector<12x16xf32>
    %c0_18 = arith.constant 0 : index
    %c0_19 = arith.constant 0 : index
    %26 = vector.load %arg8[%c0_18, %c0_19] : memref<12x1xf32, #tpu.memory_space<vmem>>, vector<12x1xf32>
    %27 = vector.broadcast %26 : vector<12x1xf32> to vector<12x16xf32>
    %28 = arith.mulf %27, %23 : vector<12x16xf32>
    %29 = arith.select %25, %23, %28 : vector<12x16xi1>, vector<12x16xf32>
    %c0_20 = arith.constant 0 : index
    %c0_21 = arith.constant 0 : index
    %c0_22 = arith.constant 0 : index
    %c0_23 = arith.constant 0 : index
    %30 = vector.load %arg9[%c0_20, %c0_21, %c0_22, %c0_23] : memref<1x1x12x16xf32, #tpu.memory_space<vmem>>, vector<1x1x12x16xf32>
    %31 = vector.shape_cast %30 : vector<1x1x12x16xf32> to vector<12x16xf32>
    %32 = vector.shape_cast %29 : vector<12x16xf32> to vector<1x1x12x16xf32>
    tpu.vector_store %arg9[%c0_20, %c0_21, %c0_22, %c0_23], %32 {strides = array<i32>} : memref<1x1x12x16xf32, #tpu.memory_space<vmem>>, vector<1x1x12x16xf32>,
    return
  }
  func.func @transform_0(%arg0: i32, %arg1: i32) -> (i32, i32, i32, i32) {
    %c0_i32 = arith.constant 0 : i32
    %0 = arith.addi %arg1, %c0_i32 : i32
    %c0_i32_0 = arith.constant 0 : i32
    %c0_i32_1 = arith.constant 0 : i32
    %c0_i32_2 = arith.constant 0 : i32
    return %arg0, %0, %c0_i32_0, %c0_i32_1 : i32, i32, i32, i32
  }
  func.func @transform_1(%arg0: i32, %arg1: i32) -> (i32, i32, i32, i32) {
    %c1_i32 = arith.constant 1 : i32
    %0 = arith.addi %arg1, %c1_i32 : i32
    %c0_i32 = arith.constant 0 : i32
    %c0_i32_0 = arith.constant 0 : i32
    %c0_i32_1 = arith.constant 0 : i32
    return %arg0, %0, %c0_i32, %c0_i32_0 : i32, i32, i32, i32
  }
  func.func @transform_2(%arg0: i32, %arg1: i32) -> (i32, i32, i32, i32) {
    %c2_i32 = arith.constant 2 : i32
    %0 = arith.addi %arg1, %c2_i32 : i32
    %c0_i32 = arith.constant 0 : i32
    %c0_i32_0 = arith.constant 0 : i32
    %c0_i32_1 = arith.constant 0 : i32
    return %arg0, %0, %c0_i32, %c0_i32_0 : i32, i32, i32, i32
  }
  func.func @transform_3(%arg0: i32, %arg1: i32) -> (i32, i32) {
    %c0_i32 = arith.constant 0 : i32
    %c0_i32_0 = arith.constant 0 : i32
    %c0_i32_1 = arith.constant 0 : i32
    return %c0_i32, %c0_i32_0 : i32, i32
  }
  func.func @transform_4(%arg0: i32, %arg1: i32) -> (i32, i32) {
    %c0_i32 = arith.constant 0 : i32
    %c0_i32_0 = arith.constant 0 : i32
    %c0_i32_1 = arith.constant 0 : i32
    return %c0_i32, %c0_i32_0 : i32, i32
  }
  func.func @transform_5(%arg0: i32, %arg1: i32) -> (i32, i32) {
    %c0_i32 = arith.constant 0 : i32
    %c0_i32_0 = arith.constant 0 : i32
    %c0_i32_1 = arith.constant 0 : i32
    return %c0_i32, %c0_i32_0 : i32, i32
  }
  func.func @transform_6(%arg0: i32, %arg1: i32) -> (i32, i32) {
    %c0_i32 = arith.constant 0 : i32
    %c0_i32_0 = arith.constant 0 : i32
    %c0_i32_1 = arith.constant 0 : i32
    return %c0_i32, %c0_i32_0 : i32, i32
  }
  func.func @transform_7(%arg0: i32, %arg1: i32) -> (i32, i32, i32, i32) {
    %c0_i32 = arith.constant 0 : i32
    %c0_i32_0 = arith.constant 0 : i32
    %c0_i32_1 = arith.constant 0 : i32
    return %arg0, %arg1, %c0_i32, %c0_i32_0 : i32, i32, i32, i32
  }
}

</mosaic_0001>

<bundles_post_ra>
// kernel: tpu_custom_call.1
= control target key start
LH: loop header
LB: loop body
LE: loop exit
PB: predicated region body
PF: predicated region fallthrough
CT: control target
= control target key end

     0   :  { %s1385_s0 = inlined_call_operand.hbm [shape: f32[2,18,8,18], index: 0, kind: input, shape index: {}]   ;;  %s1386_s1 = inlined_call_operand.hbm [shape: f32[2,18,8,18], index: 1, kind: input, shape index: {}]   ;;  %s1387_s2 = inlined_call_operand.hbm [shape: f32[2,18,8,18], index: 2, kind: input, shape index: {}]   ;;  %s1388_s3 = inlined_call_operand.vmem [shape: f32[12,72], index: 3, kind: input, shape index: {}]   ;;  %s1389_s4 = inlined_call_operand.vmem [shape: f32[12,1], index: 4, kind: input, shape index: {}]   ;;  %s1390_s5 = inlined_call_operand.vmem [shape: f32[12,1], index: 5, kind: input, shape index: {}]   ;;  %s1391_s6 = inlined_call_operand.vmem [shape: f32[12,1], index: 6, kind: input, shape index: {}]   ;;  %s1392_s7 = inlined_call_operand.vmem [shape: f32[2,16,12,16], index: 7, kind: output, shape index: {}]  }
   0x1   :  { %1403 = sst [smem:[#allocation14_spill]] %s1385_s0 }
   0x2   :  { %1404 = sst [smem:[#allocation15_spill]] %s1386_s1 }
   0x3   :  { %1405 = sst [smem:[#allocation16_spill]] %s1388_s3 }
   0x4   :  { %1406 = sst [smem:[#allocation17_spill]] %s1389_s4 }
   0x5   :  { %1407 = sst [smem:[#allocation18_spill]] %s1390_s5 }
   0x6   :  { %1408 = sst [smem:[#allocation19_spill]] %s1391_s6 }
   0x7   :  { %1409 = sst [smem:[#allocation20_spill]] %s1392_s7 }
   0x8   :  { %12 = vsyncpa [#allocation3], 0 }
   0x9   :  { %14 = vsyncpa [#allocation3 + $0x1], 0 }
   0xa   :  { %15 = vsyncpa [#allocation5], 0 }
   0xb   :  { %17 = vsyncpa [#allocation5 + $0x1], 0  ;;  %s1093_s24 = smov 0   ;;  %s1095_s25 = smov 0  }
   0xc   :  { %s1097_s26 = smov 0   ;;  %s1099_s27 = smov 0  }
   0xd   :  { %s1101_s28 = smov 0   ;;  %s1103_s29 = smov 0  }
   0xe   :  { %s1105_s30 = smov 0   ;;  %s1107_s8 = smov 0  }
   0xf   :  { %s1109_s9 = smov 0   ;;  %s1111_s10 = smov 0  }
  0x10   :  { %s1113_s11 = smov 0   ;;  %s1115_s12 = smov 0  }
  0x11   :  { %s1117_s13 = smov 0   ;;  %s1119_s14 = smov 0  }
  0x12 LB: > { %1410 = sst [smem:[#allocation10_spill]] %s1032_s10  ;;  %s1393_s15 = sadd.s32 4294967295, %s1048_s14   ;;  %s1048_s14 = sphi %s1119_s14, %s23_s14   ;;  %s1044_s13 = sphi %s1117_s13, %s1447_s13   ;;  %s1040_s12 = sphi %s1115_s12, %s1446_s12   ;;  %s1036_s11 = sphi %s1113_s11, %s1445_s11   ;;  %s1032_s10 = sphi %s1111_s10, %s1444_s10   ;;  %s1028_s9 = sphi %s1109_s9, %s1443_s9   ;;  %s1024_s8 = sphi %s1107_s8, %s1442_s8   ;;  %s1020_s30 = sphi %s1105_s30, %s1441_s30   ;;  %s1016_s29 = sphi %s1103_s29, %s1440_s29   ;;  %s1012_s28 = sphi %s1101_s28, %s1439_s28   ;;  %s1008_s27 = sphi %s1099_s27, %s1438_s27   ;;  %s1004_s26 = sphi %s1097_s26, %s1437_s26   ;;  %s1000_s25 = sphi %s1095_s25, %s1436_s25   ;;  %s996_s24 = sphi %s1093_s24, %s1435_s24  }
  0x13   : > { %1411 = sst [smem:[#allocation11_spill]] %s1036_s11  ;;  %s32_s16 = sadd.s32 1, %s1040_s12 }
  0x14   : > { %p33_p0 = scmp.ge.s32.totalorder %s32_s16, 16  ;;  %s35_s17 = sadd.s32 1, %s1044_s13 }
  0x15   : > { %p52_p1 = scmp.eq.s32.totalorder %s1048_s14, 0  ;;  %p1169_p2 = scmp.eq.s32.totalorder %s1393_s15, 0 }
  0x16   : > { %s1173_s19 = scalar_select %p33_p0, 0, %s32_s16  }
  0x17   : > { %s1449_s17 = smov (!%p33_p0, %s35_s17), %s1044_s13  ;;  %s74_s23 = sadd.s32 1, %s1016_s29 }
  0x18   : > { %s40_s20 = ssub.s32 %s1040_s12, %s1173_s19  ;;  %s68_s21 = sadd.s32 1, %s1173_s19 }
  0x19   : > { %p37_p3 = scmp.ge.s32.totalorder %s1449_s17, 2  ;;  %s70_s22 = ssub.s32 %s32_s16, %s68_s21 }
  0x1a   : > { %p81_p4 = scmp.ne.s32.totalorder %s1016_s29, %s1012_s28  ;;  %p87_p6 = scmp.ne.s32.totalorder %s1012_s28, %s1008_s27 }
  0x1b   : > { %s1451_s17 = smov (%p37_p3, %s1449_s17), 0  ;;  %s97_s3 = sadd.s32 2, %s1040_s12 }
  0x1c   : > { %1413 = sst [smem:[#allocation12_spill]] %s1451_s17  ;;  %p1186_p5 = por %p81_p4, %p52_p1 }
  0x1d   : > { %s39_s7 = ssub.s32 %s1044_s13, %s1451_s17  ;;  %p1200_p9 = por %p87_p6, %p1169_p2 }
  0x1e   : > { %s1195_s10 = sor.u32 %s40_s20, %s39_s7  ;;  %s71_s16 = sor.u32 %s70_s22, %s39_s7 }
  0x1f   : > { %p42_p7 = scmp.eq.s32.totalorder %s1195_s10, 0  ;;  %p72_p8 = scmp.eq.s32.totalorder %s71_s16, 0 }
  0x20   : > { %s1415_s21 = scalar_select %p1200_p9, 1, 0 }
  0x21   : > { %s98_s11 = sadd.s32 2, %s1173_s19  ;;  %p717_p10 = scmp.lt.s32.totalorder %s1048_s14, 32 }
  0x22   : > { %1416 = sst [smem:[#allocation13_spill]] %s1415_s21  ;;  %s100_s5 = ssub.s32 %s97_s3, %s98_s11 }
  0x23   : > { %s1206_s6 = scalar_select %p72_p8, %s1016_s29, %s74_s23  }
  0x24   : > { %s101_s27 = sor.u32 %s100_s5, %s39_s7  ;;  %s700_s22 = smul.u32 18, %s1044_s13 }
  0x25   : > { %p1209_p11 = scmp.eq.s32.totalorder %s101_s27, 0  ;;  %s286_s16 = sand.u32 1, %s1048_s14  }
  0x26   : > { %s288_s17 = sand.u32 1, %s1016_s29   ;;  %s273_s4 = sadd.s32 %s1040_s12, %s700_s22 }
  0x27   : > { %s1217_s21 = sshll.u32 %s273_s4, 3  ;;  %s676_s3 = sshll.u32 %s288_s17, 3 }
  0x28   : > { %s1418_s1 = sld [smem:[#allocation15_spill]]  ;;  %s290_s27 = scalar_lea.vmem [#allocation4], %s676_s3 }
  0x29   : > { %s301_s22 = sshll.u32 %s290_s27, 4  ;;  %p711_p12 = pnand %p717_p10, %p1186_p5  ;;  %s302_s22 = int_to_ptr.vmem [resolvable:$true] %s301_s22 }
  0x2a   : > { %p680_p13 = scmp.ge.s32.totalorder %s1048_s14, 1  ;;  %p328_p0 = scmp.lt.s32.totalorder %s1048_s14, 33 }
  0x2b   : > { %s1229_s17 = scalar_lea.sflag [#allocation5], %s286_s16  ;;  %s44_s3 = sadd.s32 1, %s1028_s9 }
  0x2c   : > { %p1232_p3 = pnand %p680_p13, %p328_p0  ;;  %p51_p4 = scmp.ne.s32.totalorder %s1028_s9, %s1024_s8 }
  0x2d   : > { %s1242_s7 = scalar_select %p42_p7, %s1028_s9, %s44_s3  }
  0x2e   : > { %s569_s11 = scalar_lea.hbm %s1418_s1, %s1217_s21  ;;  %p53_p5 = por %p52_p1, %p51_p4 }
  0x2f   : > { %s570_s23 = scalar_lea.hbm %s569_s11, 8  ;;  %p57_p6 = scmp.ne.s32.totalorder %s1024_s8, %s1020_s30 }
  0x30   : > { %s299_s4 = sshll.u32 %s570_s23, 4  ;;  %s265_s15 = sand.u32 1, %s1028_s9   ;;  %s300_s4 = int_to_ptr.hbm [resolvable:$true] %s299_s4 }
  0x31   : > { %713 = dma.hbm_to_vmem [thread:$0]  (!%p711_p12), %s300_s4, 128, %s302_s22, %s1229_s17  }
  0x32   : > { %s1420_s0 = sld [smem:[#allocation14_spill]]  ;;  %p1255_p8 = por %p1169_p2, %p57_p6 }
  0x33   : > { %s674_s27 = sshll.u32 %s265_s15, 3  ;;  %p708_p7 = pnand %p717_p10, %p53_p5 }
  0x34   : > { %s269_s30 = scalar_lea.vmem [#allocation2], %s674_s27  ;;  %s266_s3 = scalar_lea.sflag [#allocation3], %s265_s15 }
  0x35   : > { %s279_s4 = sshll.u32 %s269_s30, 4  ;;  %s104_s16 = sadd.s32 1, %s1004_s26  ;;  %s280_s4 = int_to_ptr.vmem [resolvable:$true] %s279_s4 }
  0x36   : > { %p111_p12 = scmp.ne.s32.totalorder %s1004_s26, %s1000_s25  ;;  %p117_p0 = scmp.ne.s32.totalorder %s1000_s25, %s996_s24 }
  0x37   : > { %s1267_s11 = scalar_select %p1209_p11, %s1004_s26, %s104_s16  }
  0x38   : > { %s275_s23 = scalar_lea.hbm %s1420_s0, %s1217_s21  ;;  %p113_p13 = por %p111_p12, %p52_p1 }
  0x39   : > { %s277_s22 = sshll.u32 %s275_s23, 4  ;;  %s310_s0 = sand.u32 1, %s1004_s26   ;;  %s278_s22 = int_to_ptr.hbm [resolvable:$true] %s277_s22 }
  0x3a   : > { %710 = dma.hbm_to_vmem [thread:$0]  (!%p708_p7), %s278_s22, 128, %s280_s4, %s266_s3  }
  0x3b   : > { %s577_s27 = scalar_lea.hbm %s1387_s2, %s1217_s21  ;;  %p1280_p4 = por %p117_p0, %p1169_p2 }
  0x3c   : > { %s678_s15 = sshll.u32 %s310_s0, 3  ;;  %s578_s22 = scalar_lea.hbm %s577_s27, 16 }
  0x3d   : > { %s321_s4 = sshll.u32 %s578_s22, 4  ;;  %s312_s3 = scalar_lea.vmem [#allocation6], %s678_s15  ;;  %s322_s4 = int_to_ptr.hbm [resolvable:$true] %s321_s4 }
  0x3e   : > { %s323_s20 = sshll.u32 %s312_s3, 4  ;;  %p714_p1 = pnand %p717_p10, %p113_p13  ;;  %s324_s20 = int_to_ptr.vmem [resolvable:$true] %s323_s20 }
  0x3f   : > { %332 = sbr.rel (%p1232_p3) target bundleno = 351 (0x15f), region = 48  ;;  %s334_s1 = sand.u32 (!%p1232_p3), 1, %s1024_s8  }
  0x40   : > { %716 = dma.hbm_to_vmem [thread:$0]  (!%p714_p1), %s322_s4, 128, %s324_s20, %s1229_s17  }
  0x41   : > { %s681_s24 = sshll.u32 (!%p1232_p3), %s334_s1, 3  ;;  %s335_s18 = scalar_lea.sflag (!%p1232_p3), [#allocation3], %s334_s1 }
  0x42   : > { %s338_s21 = scalar_lea.vmem (!%p1232_p3), [#allocation2], %s681_s24 }
  0x44   : > { %983 = dma.done.wait (%p1255_p8), %s335_s18, 128  }
  0x45   : > { %985 = vsyncadd (%p1255_p8), %s335_s18, 4294967168  ;;  %s1423_s0 = sadd.s32 4294967295, %s1048_s14   ;;  %s346_s17 = sand.u32 1, %s1012_s28  }
  0x46   : > { %s344_s23 = sand.u32 1, %s1423_s0   ;;  %s682_s27 = sshll.u32 %s346_s17, 3 }
  0x47   : > { %s345_s5 = scalar_lea.sflag [#allocation5], %s344_s23  ;;  %s348_s15 = scalar_lea.vmem [#allocation4], %s682_s27 }
  0x48   : > { %987 = dma.done.wait (%p1200_p9), %s345_s5, 128  }
  0x49   : > { %989 = vsyncadd (%p1200_p9), %s345_s5, 4294967168  ;;  %s356_s22 = sand.u32 1, %s1000_s25  }
  0x4a   : > { %s683_s4 = sshll.u32 %s356_s22, 3 }
  0x4b   : > { %s358_s10 = scalar_lea.vmem [#allocation6], %s683_s4 }
  0x4c   : > { %991 = dma.done.wait (%p1280_p4), %s345_s5, 128  }
  0x4d   : > { %993 = vsyncadd (%p1280_p4), %s345_s5, 4294967168  ;;  %v417_v0 = vld [vmem:[%s358_s10] sm:$0xff]  ;;  %v416_v1 = vld [vmem:[%s348_s15] sm:$0xff]  ;;  %s1050_s3 = smov 126   ;;  %s1051_s20 = smov 127   ;;  %v1052_v4 = vmov 0  }
  0x4e   : > { %v415_v2 = vld [vmem:[%s338_s21] sm:$0xff]  ;;  %436 = vrot.lane.b32.xlu0 %v417_v0, %s1050_s3  ;;  %429 = vrot.lane.b32.xlu1 %v416_v1, %s1050_s3  ;;  %s1425_s18 = sld [smem:[#allocation17_spill]]  ;;  %vm441_vm0 = vcmask 588800   ;;  %vm517_vm1 = vcmask 130048   ;;  %vm519_vm4 = vcmask 125952  }
  0x4f   : > { %422 = vrot.lane.b32.xlu2 %v415_v2, %s1050_s3  ;;  %834 = vset.pattern.permute.xlu1 %v1052_v4  ;;  %s1426_s23 = sld [smem:[#allocation18_spill]] }
  0x50   : > { %833 = vset.pattern.permute.xlu0 %v1052_v4  ;;  %835 = vset.pattern.permute.xlu2 %v1052_v4  ;;  %s1427_s22 = sld [smem:[#allocation19_spill]] }
  0x51   : > { %s1428_s3 = sld [smem:[#allocation11_spill]] }
  0x52   : > { %s1430_s30 = sld [smem:[#allocation16_spill]] }
  0x53   : > { %s1432_s1 = sld [smem:[#allocation20_spill]] }
  0x54   : > { %v472_v3 = vld [vmem:[%s1425_s18 + $0x8] sm:$0xf]  ;;  %v471_v5 = vld [vmem:[%s1425_s18] sm:$0xff] }
  0x55   : > { %v485_v6 = vld [vmem:[%s1426_s23] sm:$0xff]  ;;  %v486_v7 = vld [vmem:[%s1426_s23 + $0x8] sm:$0xf] }
  0x56   : > { %433 = vrot.lane.b32.xlu0 %v417_v0, %s1051_s20  ;;  %426 = vrot.lane.b32.xlu1 %v416_v1, %s1051_s20  ;;  %v502_v8 = vld [vmem:[%s1427_s22 + $0x8] sm:$0xf]  ;;  %v501_v9 = vld [vmem:[%s1427_s22] sm:$0xff] }
  0x57   : > { %419 = vrot.lane.b32.xlu2 %v415_v2, %s1051_s20  ;;  %s1429_s20 = sld [smem:[#allocation10_spill]]  ;;  %p406_p2 = scmp.lt.s32.totalorder %s1428_s3, 1 }
  0x58   : > { %s1431_s0 = smov %s1430_s30  ;;  %v439_v16 = vld [vmem:[%s1430_s30] sm:$0xff] }
  0x59   : > { %v440_v17 = vld [vmem:[%s1431_s0 + $0x8] sm:$0xf]  ;;  %s1453_s3 = smov (!%p406_p2, %s1428_s3), 1 }
  0x5a   : > { %s685_s27 = sshll.u32 %s1453_s3, 5 }
  0x5d   : > { %p408_p9 = scmp.lt.s32.totalorder %s1429_s20, 15 }
  0x5e   : > { %480 = vperm.xlu1 %834, %v472_v3   ;;  %475 = vperm.xlu0 %833, %v471_v5  }
  0x5f   : > { %489 = vperm.xlu2 %835, %v485_v6   ;;  %s1455_s20 = smov (!%p408_p9, %s1429_s20), 15 }
  0x60   : > { %s684_s17 = sshll.u32 %s1455_s20, 1 }
  0x61   : > { %s412_s5 = sadd.s32 %s685_s27, %s684_s17 }
  0x62   : > { %s686_s15 = sshll.u32 %s412_s5, 3 }
  0x63   : > { %s414_s24 = scalar_lea.vmem %s1432_s1, %s686_s15 }
  0x66   : > { %494 = vperm.xlu1 %834, %v486_v7   ;;  %510 = vperm.xlu0 %833, %v502_v8  }
  0x67   : > { %505 = vperm.xlu2 %835, %v501_v9  }
  0xa9   : > { %v423_v13 = vpop.permute.xlu2 %422 }
  0xb1   : > { %v420_v15 = vpop.permute.xlu2 %419 }
  0xb9   : > { %v490_v20 = vpop.permute.xlu2 %489 }
  0xc0   : > { %v437_v10 = vpop.permute.xlu0 %436  ;;  %v430_v11 = vpop.permute.xlu1 %429 }
  0xc1   : > { %455 = vmatpush.msra.mxu0 %v437_v10  ;;  %691 = vmatpush.msra.mxu1 %v437_v10  ;;  %v506_v29 = vpop.permute.xlu2 %505 }
  0xc8   : > { %v434_v12 = vpop.permute.xlu0 %433  ;;  %v427_v14 = vpop.permute.xlu1 %426 }
  0xc9   : > { %456 = vmatpush.msra.mxu0 %v434_v12  ;;  %692 = vmatpush.msra.mxu1 %v434_v12 }
  0xcb   : > { %457 = vmatpush.msra.mxu0 %v417_v0  ;;  %693 = vmatpush.msra.mxu1 %v417_v0 }
  0xcd   : > { %458 = vmatpush.msra.mxu0 %v430_v11  ;;  %694 = vmatpush.msra.mxu1 %v430_v11 }
  0xcf   : > { %459 = vmatpush.msra.mxu0 %v427_v14  ;;  %695 = vmatpush.msra.mxu1 %v427_v14 }
  0xd0   : > { %v481_v18 = vpop.permute.xlu1 %480  ;;  %v476_v19 = vpop.permute.xlu0 %475 }
  0xd1   : > { %460 = vmatpush.msra.mxu0 %v416_v1  ;;  %696 = vmatpush.msra.mxu1 %v416_v1 }
  0xd3   : > { %461 = vmatpush.msra.mxu0 %v423_v13  ;;  %697 = vmatpush.msra.mxu1 %v423_v13 }
  0xd5   : > { %462 = vmatpush.msra.mxu0 %v420_v15  ;;  %698 = vmatpush.msra.mxu1 %v420_v15 }
  0xd7   : > { %463 = vmatpush.msra.mxu0 %v415_v2  ;;  %699 = vmatpush.msra.mxu1 %v415_v2 }
  0xd8   : > { %687 = vmatmul.msk.f32.vlgmr.msra.gmra.mxu0 %vm441_vm0, %v439_v16  ;;  %688 = vmatmul.msk.f32.vlgmr.msra.gmra.mxu1 %vm441_vm0, %v440_v17  ;;  %v495_v25 = vpop.permute.xlu1 %494  ;;  %v511_v28 = vpop.permute.xlu0 %510 }
 0x155   : > { %v465_v21 = vpop.f32.mrf.mxu0  ;;  %v468_v22 = vpop.f32.mrf.mxu1 }
 0x156   : > { %v483_v23 = vmul.f32 %v476_v19, %v465_v21  ;;  %v484_v24 = vmul.f32 %v481_v18, %v468_v22 }
 0x158   : > { %v497_v26 = vadd.f32 %v490_v20, %v483_v23  ;;  %v498_v27 = vadd.f32 %v495_v25, %v484_v24 }
 0x15a   : > { %vm499_vm2 = vcmp.ge.f32.partialorder %v497_v26, 0.0  ;;  %v513_v30 = vmul.f32 %v506_v29, %v497_v26  ;;  %vm500_vm3 = vcmp.ge.f32.partialorder %v498_v27, 0.0  ;;  %v514_v31 = vmul.f32 %v511_v28, %v498_v27 }
 0x15c   : > { %v515_v32 = vsel %vm499_vm2, %v497_v26, %v513_v30  ;;  %v516_v33 = vsel %vm500_vm3, %v498_v27, %v514_v31 }
 0x15d   : > { %518 = vst.msk [vmem:[%s414_s24] sm:$0xff] %vm517_vm1, %v515_v32 }
 0x15e   : > { %520 = vst.msk [vmem:[%s414_s24 + $0x8] sm:$0xf] %vm519_vm4, %v516_v33 }
 0x15f PF: > { %s23_s14 = sadd.s32 1, %s1048_s14   ;;  %s1434_s20 = sld [smem:[#allocation12_spill]] }
 0x160   : > { %p1338_p10 = scmp.ge.s32.totalorder %s23_s14, 34   ;;  %s1435_s24 = smov %s1000_s25 }
 0x161   : > { %s1436_s25 = smov %s1004_s26  ;;  %s1437_s26 = smov %s1267_s11 }
 0x162   : > { %s1438_s27 = smov %s1012_s28  ;;  %s1439_s28 = smov %s1016_s29 }
 0x163   : > { %s1440_s29 = smov %s1206_s6  ;;  %s1441_s30 = smov %s1024_s8 }
 0x164   : > { %s1442_s8 = smov %s1028_s9  ;;  %s1443_s9 = smov %s1242_s7 }
 0x165   : > { %s1444_s10 = smov %s1040_s12  ;;  %s1445_s11 = smov %s1044_s13 }
 0x166   : > { %s1446_s12 = smov %s1173_s19  ;;  %s1447_s13 = smov %s1434_s20 }
 0x167   :  { %22 = sbr.rel (!%p1338_p10) target bundleno = 18 (0x12), region = 112 }
 0x16c   :  { %550 = vsyncpa [#allocation3], 1 }
 0x16d   :  { %552 = vsyncpa [#allocation3 + $0x1], 1 }
 0x16e   :  { %553 = vsyncpa [#allocation5], 1 }
 0x16f   :  { %555 = vsyncpa [#allocation5 + $0x1], 1 }

</bundles_post_ra>
